<compile_context>
chip_gen: v7x
topology: tpu7x:2x2x1
jax: 0.10.0
libtpu: 0.0.40
codegen_flags: <defaults>
</compile_context>

<pallas_src>
import jax
import jax.numpy as jnp
from jax.experimental import pallas as pl
from jax.experimental.pallas import tpu as pltpu


def _upconv_kernel(x_ref, w_ref, b_ref, o_ref):
    # x_ref: (Cin, T)       -- NCHW-native slab of one batch image (T spatial pixels)
    # w_ref: (Cout*4, Cin)  -- transposed-conv weights, rows ordered (co, kh, kw)
    # b_ref: (Cout*4, 1)    -- f32 bias column, broadcast along lanes
    # o_ref: (Cout*4, T)
    acc = jnp.dot(w_ref[...], x_ref[...], preferred_element_type=jnp.float32)
    o_ref[...] = (acc + b_ref[...]).astype(o_ref.dtype)


def upconv_forward(x_nchw, weight, bias, *, tile_hw=2048, compute_dtype=None):
    """ConvTranspose2d(Cin, Cout, kernel_size=2, stride=2, bias=True).

    x_nchw : (N, Cin, H, W)
    weight : (Cin, Cout, 2, 2)   (PyTorch ConvTranspose2d weight layout)
    bias   : (Cout,)
    returns: (N, Cout, 2H, 2W)   (NCHW, dtype of the input)
    """
    N, Cin, H, W = x_nchw.shape
    Cin_w, Cout, KH, KW = weight.shape
    assert Cin == Cin_w and KH == 2 and KW == 2
    HW = H * W
    Nout = Cout * 4
    out_dtype = x_nchw.dtype

    if compute_dtype is not None:
        # bf16 streaming: halves the dominant HBM traffic, native MXU rate.
        x_nchw = x_nchw.astype(compute_dtype)
        weight = weight.astype(compute_dtype)

    # NCHW-native flattening: pure reshape, no HBM transpose of x.
    x_flat = x_nchw.reshape(N, Cin, HW)
    # (Cin, Cout, 2, 2) -> (Cout*4, Cin), rows ordered (co, kh, kw). Tiny, one-off.
    w2 = jnp.transpose(weight, (1, 2, 3, 0)).reshape(Nout, Cin)
    # Bias per output channel, repeated over the 4 (kh, kw) positions, kept f32.
    b2 = jnp.repeat(bias.astype(jnp.float32), 4).reshape(Nout, 1)

    # ---- spatial tile: large (amortize ~0.35us/step), lane-aligned, VMEM-safe --
    in_bytes = jnp.dtype(x_flat.dtype).itemsize
    out_bytes = jnp.dtype(out_dtype).itemsize
    if HW <= tile_hw:
        tile = HW                                   # full dim: always a legal block
    else:
        tile = max(128, (min(tile_hw, HW) // 128) * 128)
        # Keep double-buffered x + out tiles under ~8 MiB so we fit the default
        # scoped VMEM on every generation (v5e 16 MiB, v6e 32 MiB, v7x 64 MiB phys).
        per_col = 2 * (Cin * in_bytes + Nout * out_bytes)
        while tile > 128 and tile * per_col > 8 * 1024 * 1024:
            tile -= 128
    num_t = pl.cdiv(HW, tile)   # partial tail block handled by Pallas masking

    # NOTE: for very wide layers (Nout = Cout*4 > 256) a second grid axis tiling
    # Nout (multiple of 128) would keep the weight block and output tile in the
    # MXU sweet spot; at the module's Cout=32 (Nout=128) it is unnecessary.

    cost = pl.CostEstimate(
        flops=2 * N * HW * Cin * Nout,
        transcendentals=0,
        bytes_accessed=(N * Cin * HW * in_bytes          # streamed input
                        + Nout * Cin * in_bytes          # weights (resident)
                        + Nout * 4                       # bias
                        + N * Nout * HW * out_bytes),    # output
    )

    y_flat = pl.pallas_call(
        _upconv_kernel,
        out_shape=jax.ShapeDtypeStruct((N, Nout, HW), out_dtype),
        grid_spec=pltpu.PrefetchScalarGridSpec(
            num_scalar_prefetch=0,
            grid=(N, num_t),
            in_specs=[
                pl.BlockSpec((None, Cin, tile), lambda n, t: (n, 0, t)),
                pl.BlockSpec((Nout, Cin), lambda n, t: (0, 0)),
                pl.BlockSpec((Nout, 1), lambda n, t: (0, 0)),
            ],
            out_specs=pl.BlockSpec((None, Nout, tile), lambda n, t: (n, 0, t)),
        ),
        compiler_params=pltpu.CompilerParams(
            dimension_semantics=("parallel", "parallel"),
        ),
        cost_estimate=cost,
    )(x_flat, w2, b2)

    # ---- glue: interleave the 2x2 patches into the (2H, 2W) NCHW grid ---------
    # (N, Cout*4, H*W) -> (N, Cout, 2, 2, H, W) -> (N, Cout, H, 2, W, 2) -> NCHW.
    # This single output pass is the only XLA-side layout op left.
    y = y_flat.reshape(N, Cout, 2, 2, H, W)
    y = jnp.transpose(y, (0, 1, 4, 2, 5, 3)).reshape(N, Cout, 2 * H, 2 * W)
    return y


def _reference_upconv(x_nchw, weight, bias):
    # Pure-JAX reference for ConvTranspose2d(k=2, s=2).
    y = jnp.einsum("nihw,iojk->nohjwk", x_nchw, weight)
    N, Cout, H, _, W, _ = y.shape
    y = y.reshape(N, Cout, 2 * H, 2 * W)
    return y + bias[None, :, None, None]


if __name__ == "__main__":
    key = jax.random.PRNGKey(0)
    k_x, k_w, k_b, k_x2, k_w2, k_b2 = jax.random.split(key, 6)

    # Module defaults: input_ch=64, output_ch=32; small spatial size.
    N, Cin, H, W = 2, 64, 8, 8
    Cout = 32
    x = jax.random.normal(k_x, (N, Cin, H, W), dtype=jnp.float32)
    fan = 1.0 / (Cin * 2 * 2) ** 0.5
    weight = jax.random.uniform(k_w, (Cin, Cout, 2, 2), jnp.float32, -fan, fan)
    bias = jax.random.uniform(k_b, (Cout,), jnp.float32, -fan, fan)

    ref = _reference_upconv(x, weight, bias)

    # f32 path.
    out = jax.block_until_ready(upconv_forward(x, weight, bias))
    assert out.shape == (N, Cout, 2 * H, 2 * W)
    assert jnp.allclose(out, ref, atol=1e-4, rtol=1e-4)

    # bf16 streaming path (halved HBM traffic), f32 accumulation.
    out_bf16 = jax.block_until_ready(
        upconv_forward(x, weight, bias, compute_dtype=jnp.bfloat16))
    assert jnp.allclose(out_bf16, ref, atol=5e-2, rtol=5e-2)

    # Shape whose flattened spatial dim is NOT a multiple of the tile:
    # exercises the cdiv grid + masked tail block (old divisibility assert removed).
    N2, Cin2, Cout2, H2, W2 = 1, 16, 8, 24, 24          # H*W = 576 = 2*256 + 64
    x2 = jax.random.normal(k_x2, (N2, Cin2, H2, W2), dtype=jnp.float32)
    fan2 = 1.0 / (Cin2 * 2 * 2) ** 0.5
    weight2 = jax.random.uniform(k_w2, (Cin2, Cout2, 2, 2), jnp.float32, -fan2, fan2)
    bias2 = jax.random.uniform(k_b2, (Cout2,), jnp.float32, -fan2, fan2)
    out2 = jax.block_until_ready(upconv_forward(x2, weight2, bias2, tile_hw=256))
    ref2 = _reference_upconv(x2, weight2, bias2)
    assert out2.shape == (N2, Cout2, 2 * H2, 2 * W2)
    assert jnp.allclose(out2, ref2, atol=1e-4, rtol=1e-4)

    print("KERNEL_OK")
</pallas_src>

<mosaic_0001>
module attributes {stable_mosaic.version = 11 : i64} {
  func.func @_upconv_kernel(%arg0: i32, %arg1: i32, %arg2: memref<1x64x64xf32, #tpu.memory_space<vmem>>, %arg3: memref<128x64xf32, #tpu.memory_space<vmem>>, %arg4: memref<128x1xf32, #tpu.memory_space<vmem>>, %arg5: memref<1x128x64xf32, #tpu.memory_space<vmem>>) attributes {dimension_semantics = [#tpu.dimension_semantics<parallel>, #tpu.dimension_semantics<parallel>], iteration_bounds = array<i64: 2, 1>, scalar_prefetch = 0 : i64, scratch_operands = 0 : i64, tpu.core_type = #tpu.core_type<tc>, window_params = [{transform_indices = @transform_0, window_bounds = array<i64: 1, 64, 64>}, {pipeline_mode = #tpu.pipeline_mode<synchronous>, transform_indices = @transform_1, window_bounds = array<i64: 128, 64>}, {pipeline_mode = #tpu.pipeline_mode<synchronous>, transform_indices = @transform_2, window_bounds = array<i64: 128, 1>}, {transform_indices = @transform_3, window_bounds = array<i64: 1, 128, 64>}]} {
    %c0 = arith.constant 0 : index
    %c0_0 = arith.constant 0 : index
    %0 = vector.load %arg3[%c0, %c0_0] : memref<128x64xf32, #tpu.memory_space<vmem>>, vector<128x64xf32>
    %c0_1 = arith.constant 0 : index
    %c0_2 = arith.constant 0 : index
    %c0_3 = arith.constant 0 : index
    %1 = vector.load %arg2[%c0_1, %c0_2, %c0_3] : memref<1x64x64xf32, #tpu.memory_space<vmem>>, vector<1x64x64xf32>
    %2 = vector.shape_cast %1 : vector<1x64x64xf32> to vector<64x64xf32>
    %cst = arith.constant dense<0.000000e+00> : vector<128x64xf32>
    %3 = tpu.matmul %0, %2, %cst {dimension_numbers = #tpu.dot_dimension_numbers<[1], [0], [0], [1], [0, 0, 1, 1], [], []>} : vector<128x64xf32>, vector<64x64xf32>, vector<128x64xf32> -> vector<128x64xf32>
    %c0_4 = arith.constant 0 : index
    %c0_5 = arith.constant 0 : index
    %4 = vector.load %arg4[%c0_4, %c0_5] : memref<128x1xf32, #tpu.memory_space<vmem>>, vector<128x1xf32>
    %5 = vector.broadcast %4 : vector<128x1xf32> to vector<128x64xf32>
    %6 = arith.addf %3, %5 : vector<128x64xf32>
    %c0_6 = arith.constant 0 : index
    %c0_7 = arith.constant 0 : index
    %c0_8 = arith.constant 0 : index
    %7 = vector.load %arg5[%c0_6, %c0_7, %c0_8] : memref<1x128x64xf32, #tpu.memory_space<vmem>>, vector<1x128x64xf32>
    %8 = vector.shape_cast %7 : vector<1x128x64xf32> to vector<128x64xf32>
    %9 = vector.shape_cast %6 : vector<128x64xf32> to vector<1x128x64xf32>
    tpu.vector_store %arg5[%c0_6, %c0_7, %c0_8], %9 {strides = array<i32>} : memref<1x128x64xf32, #tpu.memory_space<vmem>>, vector<1x128x64xf32>,
    return
  }
  func.func @transform_0(%arg0: i32, %arg1: i32) -> (i32, i32, i32) {
    %c0_i32 = arith.constant 0 : i32
    %c0_i32_0 = arith.constant 0 : i32
    return %arg0, %c0_i32, %arg1 : i32, i32, i32
  }
  func.func @transform_1(%arg0: i32, %arg1: i32) -> (i32, i32) {
    %c0_i32 = arith.constant 0 : i32
    %c0_i32_0 = arith.constant 0 : i32
    %c0_i32_1 = arith.constant 0 : i32
    return %c0_i32, %c0_i32_0 : i32, i32
  }
  func.func @transform_2(%arg0: i32, %arg1: i32) -> (i32, i32) {
    %c0_i32 = arith.constant 0 : i32
    %c0_i32_0 = arith.constant 0 : i32
    %c0_i32_1 = arith.constant 0 : i32
    return %c0_i32, %c0_i32_0 : i32, i32
  }
  func.func @transform_3(%arg0: i32, %arg1: i32) -> (i32, i32, i32) {
    %c0_i32 = arith.constant 0 : i32
    %c0_i32_0 = arith.constant 0 : i32
    return %arg0, %c0_i32, %arg1 : i32, i32, i32
  }
}

</mosaic_0001>

<bundles_post_ra>
// kernel: tpu_custom_call.1
= control target key start
LH: loop header
LB: loop body
LE: loop exit
PB: predicated region body
PF: predicated region fallthrough
CT: control target
= control target key end

     0   :  { %s804_s12 = smov 0   ;;  %s806_s13 = smov 0   ;;  %s987_s0 = inlined_call_operand.vmem [shape: f32[2,64,64], index: 0, kind: input, shape index: {}]   ;;  %s988_s1 = inlined_call_operand.vmem [shape: f32[128,64], index: 1, kind: input, shape index: {}]   ;;  %s989_s2 = inlined_call_operand.vmem [shape: f32[128,1], index: 2, kind: input, shape index: {}]   ;;  %s990_s3 = inlined_call_operand.vmem [shape: f32[2,128,64], index: 3, kind: output, shape index: {}]  }
   0x1   :  { %s808_s14 = smov 0  }
   0x2 LB: > { %s25_s15 = sadd.s32 1, %s777_s13  ;;  %p619_p0 = scmp.ge.s32.totalorder %s781_s14, 1  ;;  %s781_s14 = sphi %s808_s14, %s13_s14   ;;  %s777_s13 = sphi %s806_s13, %s992_s13   ;;  %s773_s12 = sphi %s804_s12, %s991_s12  }
   0x3   : > { %p27_p1 = scmp.ge.s32.totalorder %s25_s15, 2  ;;  %p156_p2 = scmp.lt.s32.totalorder %s781_s14, 3 }
   0x5   : > { %s994_s15 = smov (%p27_p1, %s25_s15), 0  ;;  %p157_p3 = pnand %p619_p0, %p156_p2 }
   0x6   : > { %p186_p4 = scmp.lt.s32.totalorder (!%p157_p3), %s773_s12, 1  ;;  %v202_v0 = vld [vmem:[%s988_s1] sm:$0xff] (!%p157_p3)  ;;  %vm322_vm0 = vcmask (!%p157_p3), 523264   ;;  %v783_v2 = vmov (!%p157_p3), 0   ;;  %v228_v3 = vld [vmem:[%s989_s2 + $0x10] sm:$0xff] (!%p157_p3)  ;;  %v229_v13 = vld [vmem:[%s989_s2 + $0x18] sm:$0xff] (!%p157_p3) }
   0x7   : > { %160 = sbr.rel (%p157_p3) target bundleno = 264 (0x108), region = 32  ;;  %v210_v1 = vld [vmem:[%s988_s1 + $0x40] sm:$0xff] (!%p157_p3)  ;;  %684 = vmatprep.mubr.msk.f32.mxu0 (!%p157_p3), %vm322_vm0, %v202_v0  ;;  %758 = vset.pattern.permute.xlu1 (!%p157_p3), %v783_v2  ;;  %v227_v14 = vld [vmem:[%s989_s2 + $0x8] sm:$0xff] (!%p157_p3)  ;;  %v233_v21 = vld [vmem:[%s989_s2 + $0x38] sm:$0xff] (!%p157_p3) }
   0x8   : > { %696 = vmatprep.mubr.msk.f32.mxu1 (!%p157_p3), %vm322_vm0, %v210_v1  ;;  %757 = vset.pattern.permute.xlu0 (!%p157_p3), %v783_v2  ;;  %v226_v4 = vld [vmem:[%s989_s2] sm:$0xff] (!%p157_p3)  ;;  %v231_v18 = vld [vmem:[%s989_s2 + $0x28] sm:$0xff] (!%p157_p3)  ;;  %v232_v22 = vld [vmem:[%s989_s2 + $0x30] sm:$0xff] (!%p157_p3) }
   0x9   : > { %254 = vperm.xlu1 (!%p157_p3), %758, %v228_v3   ;;  %244 = vperm.xlu0 (!%p157_p3), %757, %v226_v4   ;;  %v230_v19 = vld [vmem:[%s989_s2 + $0x20] sm:$0xff] (!%p157_p3)  ;;  %v235_v23 = vld [vmem:[%s989_s2 + $0x48] sm:$0xff] (!%p157_p3)  ;;  %v204_v27 = vld [vmem:[%s988_s1 + $0x10] sm:$0xff] (!%p157_p3) }
   0xa   : > { %v234_v24 = vld [vmem:[%s989_s2 + $0x40] sm:$0xff] (!%p157_p3)  ;;  %v203_v25 = vld [vmem:[%s988_s1 + $0x8] sm:$0xff] (!%p157_p3)  ;;  %v212_v28 = vld [vmem:[%s988_s1 + $0x50] sm:$0xff] (!%p157_p3) }
   0xb   : > { %v211_v26 = vld [vmem:[%s988_s1 + $0x48] sm:$0xff] (!%p157_p3)  ;;  %v237_v29 = vld [vmem:[%s989_s2 + $0x58] sm:$0xff] (!%p157_p3)  ;;  %v236_v30 = vld [vmem:[%s989_s2 + $0x50] sm:$0xff] (!%p157_p3) }
   0xc   : > { %v205_v31 = vld [vmem:[%s988_s1 + $0x18] sm:$0xff] (!%p157_p3)  ;;  %v206_v33 = vld [vmem:[%s988_s1 + $0x20] sm:$0xff] (!%p157_p3)  ;;  %v239_v35 = vld [vmem:[%s989_s2 + $0x68] sm:$0xff] (!%p157_p3) }
   0xd   : > { %259 = vperm.xlu1 (!%p157_p3), %758, %v229_v13   ;;  %249 = vperm.xlu0 (!%p157_p3), %757, %v227_v14   ;;  %v213_v32 = vld [vmem:[%s988_s1 + $0x58] sm:$0xff] (!%p157_p3)  ;;  %v214_v34 = vld [vmem:[%s988_s1 + $0x60] sm:$0xff] (!%p157_p3)  ;;  %v207_v37 = vld [vmem:[%s988_s1 + $0x28] sm:$0xff] (!%p157_p3) }
   0xe   : > { %s996_s12 = smov (!%p186_p4, %s773_s12), 1  ;;  %v238_v36 = vld [vmem:[%s989_s2 + $0x60] sm:$0xff]  ;;  %v215_v38 = vld [vmem:[%s988_s1 + $0x68] sm:$0xff]  ;;  %v208_v39 = vld [vmem:[%s988_s1 + $0x30] sm:$0xff] }
   0xf   : > { %s642_s20 = sshll.u32 %s996_s12, 6  ;;  %v216_v40 = vld [vmem:[%s988_s1 + $0x70] sm:$0xff]  ;;  %v241_v41 = vld [vmem:[%s989_s2 + $0x78] sm:$0xff]  ;;  %s643_s11 = sshll.u32 %s996_s12, 7 }
  0x10   : > { %s193_s23 = scalar_lea.vmem %s987_s0, %s642_s20  ;;  %v240_v42 = vld [vmem:[%s989_s2 + $0x70] sm:$0xff]  ;;  %v209_v43 = vld [vmem:[%s988_s1 + $0x38] sm:$0xff]  ;;  %s944_s18 = scalar_lea.vmem %s990_s3, %s643_s11 }
  0x11   : > { %v218_v5 = vld [vmem:[%s193_s23] sm:$0xff]  ;;  %v219_v6 = vld [vmem:[%s193_s23 + $0x8] sm:$0xff]  ;;  %v220_v7 = vld [vmem:[%s193_s23 + $0x10] sm:$0xff]  ;;  %269 = vperm.xlu1 %758, %v231_v18   ;;  %264 = vperm.xlu0 %757, %v230_v19  }
  0x12   : > { %v708_v8 = vpack.c.bf16 %v219_v6, %v218_v5  ;;  %v221_v9 = vld [vmem:[%s193_s23 + $0x18] sm:$0xff]  ;;  %v222_v11 = vld [vmem:[%s193_s23 + $0x20] sm:$0xff]  ;;  %v223_v12 = vld [vmem:[%s193_s23 + $0x28] sm:$0xff] }
  0x13   : > { %v712_v10 = vpack.c.bf16 %v221_v9, %v220_v7  ;;  %v716_v15 = vpack.c.bf16 %v223_v12, %v222_v11  ;;  %v224_v16 = vld [vmem:[%s193_s23 + $0x30] sm:$0xff]  ;;  %v225_v17 = vld [vmem:[%s193_s23 + $0x38] sm:$0xff] }
  0x14   : > { %709 = vmatprep.subr.bf16.mxu0 %v708_v8  ;;  %724 = vmatprep.subr.bf16.mxu1 %v708_v8  ;;  %v720_v20 = vpack.c.bf16 %v225_v17, %v224_v16  ;;  %v217_v44 = vld [vmem:[%s988_s1 + $0x78] sm:$0xff] }
  0x15   : > { %711 = vmatpush3.bf16.msra.mxu0 %v708_v8  ;;  %728 = vmatpush3.bf16.msra.mxu1 %v708_v8 }
  0x16   : > { %713 = vmatprep.subr.bf16.mxu0 %v712_v10  ;;  %725 = vmatprep.subr.bf16.mxu1 %v712_v10 }
  0x17   : > { %279 = vperm.xlu1 %758, %v233_v21   ;;  %274 = vperm.xlu0 %757, %v232_v22  }
  0x19   : > { %715 = vmatpush3.bf16.msra.mxu0 %v712_v10  ;;  %729 = vmatpush3.bf16.msra.mxu1 %v712_v10 }
  0x1a   : > { %717 = vmatprep.subr.bf16.mxu0 %v716_v15  ;;  %726 = vmatprep.subr.bf16.mxu1 %v716_v15 }
  0x1b   : > { %289 = vperm.xlu1 %758, %v235_v23   ;;  %284 = vperm.xlu0 %757, %v234_v24  }
  0x1d   : > { %719 = vmatpush3.bf16.msra.mxu0 %v716_v15  ;;  %730 = vmatpush3.bf16.msra.mxu1 %v716_v15 }
  0x1e   : > { %721 = vmatprep.subr.bf16.mxu0 %v720_v20  ;;  %727 = vmatprep.subr.bf16.mxu1 %v720_v20 }
  0x1f   : > { %299 = vperm.xlu1 %758, %v237_v29   ;;  %294 = vperm.xlu0 %757, %v236_v30  }
  0x21   : > { %723 = vmatpush3.bf16.msra.mxu0 %v720_v20  ;;  %731 = vmatpush3.bf16.msra.mxu1 %v720_v20 }
  0x23   : > { %309 = vperm.xlu1 %758, %v239_v35   ;;  %304 = vperm.xlu0 %757, %v238_v36  }
  0x24   : > { %685 = vmatmul.mubr.msk.f32.vlgmr.msra.gmra.mrb[0].mxu0 %vm322_vm0, %v203_v25  ;;  %697 = vmatmul.mubr.msk.f32.vlgmr.msra.gmra.mrb[0].mxu1 %vm322_vm0, %v211_v26 }
  0x25   : > { %687 = vmatprep.mubr.msk.f32.mxu0 %vm322_vm0, %v204_v27  ;;  %699 = vmatprep.mubr.msk.f32.mxu1 %vm322_vm0, %v212_v28 }
  0x27   : > { %319 = vperm.xlu1 %758, %v241_v41   ;;  %314 = vperm.xlu0 %757, %v240_v42  }
  0x28   : > { %688 = vmatmul.mubr.msk.f32.gmra.mrb[2].mxu0 %vm322_vm0, %v205_v31  ;;  %700 = vmatmul.mubr.msk.f32.gmra.mrb[2].mxu1 %vm322_vm0, %v213_v32 }
  0x29   : > { %690 = vmatprep.mubr.msk.f32.mxu0 %vm322_vm0, %v206_v33  ;;  %702 = vmatprep.mubr.msk.f32.mxu1 %vm322_vm0, %v214_v34 }
  0x2c   : > { %691 = vmatmul.mubr.msk.f32.gmra.mrb[4].mxu0 %vm322_vm0, %v207_v37  ;;  %703 = vmatmul.mubr.msk.f32.gmra.mrb[4].mxu1 %vm322_vm0, %v215_v38 }
  0x2d   : > { %693 = vmatprep.mubr.msk.f32.mxu0 %vm322_vm0, %v208_v39  ;;  %705 = vmatprep.mubr.msk.f32.mxu1 %vm322_vm0, %v216_v40 }
  0x30   : > { %694 = vmatmul.mubr.msk.f32.gmra.mrb[6].mxu0 %vm322_vm0, %v209_v43  ;;  %706 = vmatmul.mubr.msk.f32.gmra.mrb[6].mxu1 %vm322_vm0, %v217_v44 }
  0x88   : > { %v255_v45 = vpop.permute.xlu1 %254  ;;  %v245_v46 = vpop.permute.xlu0 %244 }
  0x8c   : > { %v260_v47 = vpop.permute.xlu1 %259  ;;  %v250_v48 = vpop.permute.xlu0 %249 }
  0x90   : > { %v270_v49 = vpop.permute.xlu1 %269  ;;  %v265_v50 = vpop.permute.xlu0 %264 }
  0x96   : > { %v280_v51 = vpop.permute.xlu1 %279  ;;  %v275_v52 = vpop.permute.xlu0 %274 }
  0x9a   : > { %v290_v53 = vpop.permute.xlu1 %289  ;;  %v285_v54 = vpop.permute.xlu0 %284 }
  0x9e   : > { %v300_v55 = vpop.permute.xlu1 %299  ;;  %v295_v56 = vpop.permute.xlu0 %294 }
  0xa2   : > { %v310_v1 = vpop.permute.xlu1 %309  ;;  %v305_v2 = vpop.permute.xlu0 %304 }
  0xa6   : > { %v320_v19 = vpop.permute.xlu1 %319  ;;  %v315_v20 = vpop.permute.xlu0 %314 }
  0xf7   : > { %v686_v57 = vpop.f32.mrb[0].mxu0  ;;  %v698_v58 = vpop.f32.mrb[0].mxu1 }
  0xf8   : > { %v443_v59 = vadd.f32 %v686_v57, %v250_v48  ;;  %v483_v60 = vadd.f32 %v698_v58, %v290_v53  ;;  %v437_v61 = vpop.f32.mrb[1].mxu0  ;;  %v477_v62 = vpop.f32.mrb[1].mxu1 }
  0xf9   : > { %v438_v63 = vadd.f32 %v437_v61, %v245_v46  ;;  %v478_v0 = vadd.f32 %v477_v62, %v285_v54 }
  0xfa   : > { %517 = vst.msk [vmem:[%s944_s18 + $0x8] sm:$0xff] %vm322_vm0, %v443_v59  ;;  %525 = vst.msk [vmem:[%s944_s18 + $0x48] sm:$0xff] %vm322_vm0, %v483_v60 }
  0xfb   : > { %516 = vst.msk [vmem:[%s944_s18] sm:$0xff] %vm322_vm0, %v438_v63  ;;  %524 = vst.msk [vmem:[%s944_s18 + $0x40] sm:$0xff] %vm322_vm0, %v478_v0  ;;  %v689_v3 = vpop.f32.mrb[2].mxu0  ;;  %v701_v4 = vpop.f32.mrb[2].mxu1 }
  0xfc   : > { %v453_v5 = vadd.f32 %v689_v3, %v260_v47  ;;  %v493_v6 = vadd.f32 %v701_v4, %v300_v55  ;;  %v447_v7 = vpop.f32.mrb[3].mxu0  ;;  %v487_v8 = vpop.f32.mrb[3].mxu1 }
  0xfd   : > { %v448_v9 = vadd.f32 %v447_v7, %v255_v45  ;;  %v488_v10 = vadd.f32 %v487_v8, %v295_v56 }
  0xfe   : > { %519 = vst.msk [vmem:[%s944_s18 + $0x18] sm:$0xff] %vm322_vm0, %v453_v5  ;;  %527 = vst.msk [vmem:[%s944_s18 + $0x58] sm:$0xff] %vm322_vm0, %v493_v6 }
  0xff   : > { %518 = vst.msk [vmem:[%s944_s18 + $0x10] sm:$0xff] %vm322_vm0, %v448_v9  ;;  %526 = vst.msk [vmem:[%s944_s18 + $0x50] sm:$0xff] %vm322_vm0, %v488_v10  ;;  %v692_v11 = vpop.f32.mrb[4].mxu0  ;;  %v704_v12 = vpop.f32.mrb[4].mxu1 }
 0x100   : > { %v463_v13 = vadd.f32 %v692_v11, %v270_v49  ;;  %v503_v14 = vadd.f32 %v704_v12, %v310_v1  ;;  %v457_v15 = vpop.f32.mrb[5].mxu0  ;;  %v497_v16 = vpop.f32.mrb[5].mxu1 }
 0x101   : > { %v458_v17 = vadd.f32 %v457_v15, %v265_v50  ;;  %v498_v18 = vadd.f32 %v497_v16, %v305_v2 }
 0x102   : > { %521 = vst.msk [vmem:[%s944_s18 + $0x28] sm:$0xff] %vm322_vm0, %v463_v13  ;;  %529 = vst.msk [vmem:[%s944_s18 + $0x68] sm:$0xff] %vm322_vm0, %v503_v14 }
 0x103   : > { %520 = vst.msk [vmem:[%s944_s18 + $0x20] sm:$0xff] %vm322_vm0, %v458_v17  ;;  %528 = vst.msk [vmem:[%s944_s18 + $0x60] sm:$0xff] %vm322_vm0, %v498_v18  ;;  %v695_v21 = vpop.f32.mrb[6].mxu0  ;;  %v707_v22 = vpop.f32.mrb[6].mxu1 }
 0x104   : > { %v473_v23 = vadd.f32 %v695_v21, %v280_v51  ;;  %v513_v24 = vadd.f32 %v707_v22, %v320_v19  ;;  %v467_v25 = vpop.f32.mrb[7].mxu0  ;;  %v507_v26 = vpop.f32.mrb[7].mxu1 }
 0x105   : > { %v468_v27 = vadd.f32 %v467_v25, %v275_v52  ;;  %v508_v28 = vadd.f32 %v507_v26, %v315_v20 }
 0x106   : > { %523 = vst.msk [vmem:[%s944_s18 + $0x38] sm:$0xff] %vm322_vm0, %v473_v23  ;;  %531 = vst.msk [vmem:[%s944_s18 + $0x78] sm:$0xff] %vm322_vm0, %v513_v24 }
 0x107   : > { %522 = vst.msk [vmem:[%s944_s18 + $0x30] sm:$0xff] %vm322_vm0, %v468_v27  ;;  %530 = vst.msk [vmem:[%s944_s18 + $0x70] sm:$0xff] %vm322_vm0, %v508_v28 }
 0x108 PF: > { %s13_s14 = sadd.s32 1, %s781_s14   ;;  %s991_s12 = smov %s777_s13 }
 0x109   : > { %p10_p5 = scmp.ge.s32.totalorder %s13_s14, 4   ;;  %s992_s13 = smov %s994_s15 }
 0x10b   :  { %12 = sbr.rel (!%p10_p5) target bundleno = 2 (0x2), region = 62 }

</bundles_post_ra>
